<compile_context>
chip_gen: v7x
topology: tpu7x:2x2x1
jax: 0.10.0
libtpu: 0.0.40
codegen_flags: <defaults>
</compile_context>

<pallas_src>
import functools

import jax
import jax.numpy as jnp
from jax import lax
from jax.experimental import pallas as pl
from jax.experimental.pallas import tpu as pltpu

_MIB = 1024 * 1024


# ---------------------------------------------------------------------------
# Kernels
# ---------------------------------------------------------------------------
def _unit_normalize_kernel(x_ref, o_ref):
    """Single-pass path: the whole feature dim is resident in the block."""
    xf = x_ref[...].astype(jnp.float32)
    sumsq = jnp.sum(xf * xf, axis=-1, keepdims=True)           # (bm, 1) f32
    # rsqrt runs on the EUP; multiply in f32 (VPU slack is free when HBM-bound)
    # and cast only at the store.  No epsilon: matches torch's x / norm.
    o_ref[...] = (xf * lax.rsqrt(sumsq)).astype(o_ref.dtype)


def _sumsq_kernel(x_ref, ss_ref, *, d_total, block_cols):
    """Wide-D pass 1: accumulate per-row sum of squares over D tiles.

    The (bm, 1) output block maps to the same index for every k step, so it stays
    resident in VMEM across the reduction axis and acts as the accumulator."""
    @pl.when(pl.program_id(1) == 0)
    def _():
        ss_ref[...] = jnp.zeros_like(ss_ref)

    xf = x_ref[...].astype(jnp.float32)
    if d_total % block_cols != 0:
        # Tail column block: mask the padded (unspecified) lanes out of the sum.
        col = lax.broadcasted_iota(jnp.int32, xf.shape, dimension=1)
        valid = (pl.program_id(1) * block_cols + col) < d_total
        xf = jnp.where(valid, xf, 0.0)
    ss_ref[...] += jnp.sum(xf * xf, axis=-1, keepdims=True)


def _scale_kernel(x_ref, ss_ref, o_ref):
    """Wide-D pass 2: y = x * rsqrt(sum_sq) per row."""
    xf = x_ref[...].astype(jnp.float32)
    o_ref[...] = (xf * lax.rsqrt(ss_ref[...])).astype(o_ref.dtype)


# ---------------------------------------------------------------------------
# Tiling helpers
# ---------------------------------------------------------------------------
def _vmem_limit_bytes():
    """Generation-aware scoped-VMEM limit: 3/4 of physical capacity, capped at
    64 MiB (-> 64 MiB on v5e/v6e's 128 MiB VMEM, 48 MiB on v7x's 64 MiB)."""
    try:
        cap = int(pltpu.get_tpu_info().vmem_capacity_bytes)
    except Exception:
        return 32 * _MIB
    return int(min(cap * 3 // 4, 64 * _MIB))


def _sublane_rows(dtype):
    """Native sublane granularity: 8 rows (4-byte), 16 (2-byte), 32 (1-byte)."""
    return max(8, 32 // jnp.dtype(dtype).itemsize)


def _bytes_per_row(ncols, itemsize):
    # input + output, double-buffered (4x), plus one f32 temporary per element.
    return (4 * itemsize + 4) * max(ncols, 128)


def _pick_block_rows(B, ncols, itemsize, budget_bytes, sublane):
    """Largest sublane-multiple row tile fitting the VMEM budget, preferring an
    even grid-step count so v7x's two TensorCores get balanced shards."""
    if B <= sublane:
        return B
    rows = int(budget_bytes // _bytes_per_row(ncols, itemsize))
    rows = min(rows, B)
    rows = max(sublane, (rows // sublane) * sublane)
    if rows >= B:
        return B
    steps = -(-B // rows)
    if steps % 2 == 1:
        # Best effort: try one extra step to get an even split across cores.
        alt = -(-B // (steps + 1))
        alt = max(sublane, -(-alt // sublane) * sublane)
        if (-(-B // alt)) % 2 == 0:
            rows = alt
    return int(rows)


# ---------------------------------------------------------------------------
# Wrapper
# ---------------------------------------------------------------------------
def unit_normalize(x, *, block_rows=None, block_cols=None):
    """Pallas TPU UnitNormalize: y = x / ||x||_2 along dim 1 (keepdim), no eps."""
    B, D = x.shape
    itemsize = jnp.dtype(x.dtype).itemsize
    sublane = _sublane_rows(x.dtype)

    vmem_limit = _vmem_limit_bytes()
    budget = max(8 * _MIB, vmem_limit - 4 * _MIB)   # compiler headroom

    # D-tiled two-pass path only if a minimum-row, full-D block cannot fit the
    # budget (or the caller forces a column tile for testing).
    wide_d = (block_cols is not None) or (
        sublane * _bytes_per_row(D, itemsize) > budget)

    if not wide_d:
        if block_rows is None:
            block_rows = _pick_block_rows(B, D, itemsize, budget, sublane)
        block_rows = min(int(block_rows), B)
        grid = (pl.cdiv(B, block_rows),)
        return pl.pallas_call(
            _unit_normalize_kernel,
            out_shape=jax.ShapeDtypeStruct((B, D), x.dtype),
            grid=grid,
            # Last dim = full D (exempt from the 128 rule): no pad/slice HBM
            # round-trips; Mosaic masks the tail lanes of the load/store.
            in_specs=[pl.BlockSpec((block_rows, D), lambda i: (i, 0))],
            out_specs=pl.BlockSpec((block_rows, D), lambda i: (i, 0)),
            compiler_params=pltpu.CompilerParams(
                dimension_semantics=("parallel",),
                vmem_limit_bytes=vmem_limit,
            ),
            cost_estimate=pl.CostEstimate(
                flops=3 * B * D,
                transcendentals=B,
                bytes_accessed=2 * B * D * itemsize,
            ),
        )(x)

    # ---------------- Wide-D fallback: tile the feature dim ----------------
    if block_cols is None:
        block_cols = 128
        while (block_cols * 2 < D
               and sublane * _bytes_per_row(block_cols * 2, itemsize) <= budget):
            block_cols *= 2
    block_cols = int(block_cols)
    if block_rows is None:
        block_rows = _pick_block_rows(B, block_cols, itemsize, budget, sublane)
    block_rows = min(int(block_rows), B)

    row_steps = pl.cdiv(B, block_rows)
    col_steps = pl.cdiv(D, block_cols)

    # Pass 1: per-row sum of squares (reduction over the D grid axis).
    sumsq = pl.pallas_call(
        functools.partial(_sumsq_kernel, d_total=D, block_cols=block_cols),
        out_shape=jax.ShapeDtypeStruct((B, 1), jnp.float32),
        grid=(row_steps, col_steps),
        in_specs=[pl.BlockSpec((block_rows, block_cols), lambda i, k: (i, k))],
        out_specs=pl.BlockSpec((block_rows, 1), lambda i, k: (i, 0)),
        compiler_params=pltpu.CompilerParams(
            dimension_semantics=("parallel", "arbitrary"),
            vmem_limit_bytes=vmem_limit,
        ),
        cost_estimate=pl.CostEstimate(
            flops=2 * B * D,
            transcendentals=0,
            bytes_accessed=B * D * itemsize + B * 4,
        ),
    )(x)

    # Pass 2: scale every D tile of a row by rsqrt of that row's sum of squares.
    return pl.pallas_call(
        _scale_kernel,
        out_shape=jax.ShapeDtypeStruct((B, D), x.dtype),
        grid=(row_steps, col_steps),
        in_specs=[pl.BlockSpec((block_rows, block_cols), lambda i, k: (i, k)),
                  pl.BlockSpec((block_rows, 1), lambda i, k: (i, 0))],
        out_specs=pl.BlockSpec((block_rows, block_cols), lambda i, k: (i, k)),
        compiler_params=pltpu.CompilerParams(
            dimension_semantics=("parallel", "parallel"),
            vmem_limit_bytes=vmem_limit,
        ),
        cost_estimate=pl.CostEstimate(
            flops=B * D,
            transcendentals=B,
            bytes_accessed=2 * B * D * itemsize + B * 4,
        ),
    )(x, sumsq)


def _reference(x):
    # torch.norm(x, 2, 1, keepdim=True); x / norm  (no epsilon, matches module)
    return x / jnp.linalg.norm(x, ord=2, axis=1, keepdims=True)


if __name__ == "__main__":
    key = jax.random.PRNGKey(0)
    k0, k1, k2 = jax.random.split(key, 3)

    # Main case: embedding-like (B, D) with lane-dense D (multiple of 128).
    x = jax.random.normal(k0, (64, 256), dtype=jnp.float32)
    out = jax.block_until_ready(unit_normalize(x))
    ref = _reference(x)
    assert out.shape == x.shape and out.dtype == x.dtype
    assert jnp.allclose(out, ref, atol=1e-5, rtol=1e-5), "mismatch (D=256)"

    # D not a multiple of 128 and batch not a multiple of the row tile:
    # exercises the masked tail-lane path (no wrapper pad/slice) and the padded
    # last row block.
    x2 = jax.random.normal(k1, (20, 72), dtype=jnp.float32)
    out2 = jax.block_until_ready(unit_normalize(x2, block_rows=8))
    assert jnp.allclose(out2, _reference(x2), atol=1e-5, rtol=1e-5), "mismatch (D=72)"

    # Force the wide-D two-pass fallback (D tiled, tail column block masked).
    x3 = jax.random.normal(k2, (24, 200), dtype=jnp.float32)
    out3 = jax.block_until_ready(unit_normalize(x3, block_rows=8, block_cols=128))
    assert jnp.allclose(out3, _reference(x3), atol=1e-5, rtol=1e-5), "mismatch (wide-D)"

    print("KERNEL_OK")
</pallas_src>

<mosaic_0001>
module attributes {stable_mosaic.version = 11 : i64} {
  func.func @_unit_normalize_kernel(%arg0: i32, %arg1: memref<64x256xf32, #tpu.memory_space<vmem>>, %arg2: memref<64x256xf32, #tpu.memory_space<vmem>>) attributes {dimension_semantics = [#tpu.dimension_semantics<parallel>], iteration_bounds = array<i64: 1>, scalar_prefetch = 0 : i64, scratch_operands = 0 : i64, tpu.core_type = #tpu.core_type<tc>, window_params = [{transform_indices = @transform_0, window_bounds = array<i64: 64, 256>}, {transform_indices = @transform_1, window_bounds = array<i64: 64, 256>}]} {
    %c0 = arith.constant 0 : index
    %c0_0 = arith.constant 0 : index
    %0 = vector.load %arg1[%c0, %c0_0] : memref<64x256xf32, #tpu.memory_space<vmem>>, vector<64x256xf32>
    %1 = arith.mulf %0, %0 : vector<64x256xf32>
    %cst = arith.constant dense<0.000000e+00> : vector<64xf32>
    %2 = vector.multi_reduction <add>, %1, %cst [1] : vector<64x256xf32> to vector<64xf32>
    %3 = vector.shape_cast %2 : vector<64xf32> to vector<64x1xf32>
    %4 = math.rsqrt %3 : vector<64x1xf32>
    %5 = vector.broadcast %4 : vector<64x1xf32> to vector<64x256xf32>
    %6 = arith.mulf %0, %5 : vector<64x256xf32>
    %c0_1 = arith.constant 0 : index
    %c0_2 = arith.constant 0 : index
    %7 = vector.load %arg2[%c0_1, %c0_2] : memref<64x256xf32, #tpu.memory_space<vmem>>, vector<64x256xf32>
    tpu.vector_store %arg2[%c0_1, %c0_2], %6 {strides = array<i32>} : memref<64x256xf32, #tpu.memory_space<vmem>>, vector<64x256xf32>,
    return
  }
  func.func @transform_0(%arg0: i32) -> (i32, i32) {
    %c0_i32 = arith.constant 0 : i32
    %c0_i32_0 = arith.constant 0 : i32
    return %arg0, %c0_i32 : i32, i32
  }
  func.func @transform_1(%arg0: i32) -> (i32, i32) {
    %c0_i32 = arith.constant 0 : i32
    %c0_i32_0 = arith.constant 0 : i32
    return %arg0, %c0_i32 : i32, i32
  }
}

</mosaic_0001>

<bundles_post_ra>
// kernel: tpu_custom_call.1
= control target key start
LH: loop header
LB: loop body
LE: loop exit
PB: predicated region body
PF: predicated region fallthrough
CT: control target
= control target key end

     0   :  { %6 = vsyncpa [#allocation3], 0  ;;  %s313_s0 = inlined_call_operand.hbm [shape: f32[64,256], index: 0, kind: input, shape index: {}]   ;;  %s314_s1 = inlined_call_operand.hbm [shape: f32[64,256], index: 1, kind: output, shape index: {}]  }
   0x1   :  { %7 = vsyncpa [#allocation4], 0  ;;  %s204_s6 = smov [#allocation2]   ;;  %s156_s10 = scalar_lea.hbm %s313_s0, 2048 }
   0x2   :  { %s13_s7 = sshll.u32 %s204_s6, 4  ;;  %p157_p0 = scmp.ne.s32.totalorder %s313_s0, %s156_s10  ;;  %s14_s7 = int_to_ptr.vmem [resolvable:$true] %s13_s7 }
   0x3   :  { %p160_p1 = scmp.lt.u32.totalorder %s156_s10, %s313_s0 }
   0x5   :  { %p162_p2 = pnand %p160_p1, %p157_p0 }
   0x7   :  { %165 = shalt.err (!%p162_p2)
}
   0x8   :  { %s166_s15 = scalar_lea.vmem %s14_s7, 2048  ;;  %p171_p4 = scmp.lt.s32.totalorder %s14_s7, %s14_s7 }
   0x9   :  { %p167_p3 = scmp.ne.s32.totalorder %s14_s7, %s166_s15  ;;  %p172_p5 = scmp.lt.s32.totalorder %s166_s15, %s166_s15 }
   0xb   :  { %p173_p6 = por %p172_p5, %p171_p4 }
   0xd   :  { %p174_p7 = pnand %p173_p6, %p167_p3 }
   0xf   :  { %177 = shalt.err (!%p174_p7)
}
  0x10   :  { %s205_s16 = smov 256   ;;  %s206_s17 = smov 16  }
  0x11   :  { %19 = dma.hbm_to_vmem [thread:$0]  %s313_s0, 2048, %s14_s7, [#allocation3], %s205_s16, %s205_s16, %s206_s17  }
  0x12   :  { %200 = dma.done.wait [#allocation3], 2048  }
  0x13   :  { %201 = vsyncadd [#allocation3], 4294965248  ;;  %v27_v0 = vld [vmem:[#allocation2 + $0x20] sm:$0xff]  ;;  %v28_v1 = vld [vmem:[#allocation2 + $0x28] sm:$0xff]  ;;  %s207_s0 = smov [#allocation5]  }
  0x14   :  { %v233_v2 = vld [vmem:[#allocation2] sm:$0xff]  ;;  %v43_v3 = vmul.f32 %v27_v0, %v27_v0  ;;  %v44_v4 = vmul.f32 %v28_v1, %v28_v1  ;;  %v24_v5 = vld [vmem:[#allocation2 + $0x8] sm:$0xff]  ;;  %v237_v7 = vld [vmem:[#allocation2 + $0x30] sm:$0xff]  ;;  %s124_s20 = sshll.u32 %s207_s0, 4  ;;  %s125_s20 = int_to_ptr.vmem [resolvable:$true] %s124_s20 }
  0x15   :  { %v39_v6 = vmul.f32 %v233_v2, %v233_v2  ;;  %v239_v8 = vld [vmem:[#allocation2 + $0x38] sm:$0xff]  ;;  %v40_v9 = vmul.f32 %v24_v5, %v24_v5  ;;  %v45_v10 = vmul.f32 %v237_v7, %v237_v7  ;;  %v245_v12 = vld [vmem:[#allocation2 + $0x10] sm:$0xff]  ;;  %v257_v19 = vld [vmem:[#allocation2 + $0x40] sm:$0xff]  ;;  %s178_s21 = scalar_lea.vmem %s125_s20, 2048  ;;  %p183_p9 = scmp.lt.s32.totalorder %s125_s20, %s125_s20 }
  0x16   :  { %v46_v11 = vmul.f32 %v239_v8, %v239_v8  ;;  %v247_v13 = vld [vmem:[#allocation2 + $0x18] sm:$0xff]  ;;  %v249_v14 = vld [vmem:[#allocation2 + $0x50] sm:$0xff]  ;;  %v61_v15 = vadd.f32 %v44_v4, %v43_v3  ;;  %v41_v16 = vmul.f32 %v245_v12, %v245_v12  ;;  %v259_v20 = vld [vmem:[#allocation2 + $0x48] sm:$0xff]  ;;  %v47_v26 = vmul.f32 %v257_v19, %v257_v19  ;;  %p179_p8 = scmp.ne.s32.totalorder %s125_s20, %s178_s21  ;;  %p184_p10 = scmp.lt.s32.totalorder %s178_s21, %s178_s21 }
  0x17   :  { %v42_v17 = vmul.f32 %v247_v13, %v247_v13  ;;  %v255_v18 = vld [vmem:[#allocation2 + $0x58] sm:$0xff]  ;;  %v55_v21 = vadd.f32 %v40_v9, %v39_v6  ;;  %v49_v23 = vmul.f32 %v249_v14, %v249_v14  ;;  %v48_v27 = vmul.f32 %v259_v20, %v259_v20  ;;  %v269_v28 = vld [vmem:[#allocation2 + $0x70] sm:$0xff]  ;;  %v273_v30 = vld [vmem:[#allocation2 + $0x60] sm:$0xff] }
  0x18   :  { %62 = vadd.xlane.f32.xlu1 %v61_v15  ;;  %v64_v22 = vadd.f32 %v46_v11, %v45_v10  ;;  %v50_v24 = vmul.f32 %v255_v18, %v255_v18  ;;  %v271_v29 = vld [vmem:[#allocation2 + $0x78] sm:$0xff]  ;;  %v275_v31 = vld [vmem:[#allocation2 + $0x68] sm:$0xff]  ;;  %v53_v33 = vmul.f32 %v269_v28, %v269_v28  ;;  %v51_v36 = vmul.f32 %v273_v30, %v273_v30  ;;  %p185_p11 = por %p184_p10, %p183_p9 }
  0x19   :  { %56 = vadd.xlane.f32.xlu0 %v55_v21  ;;  %v58_v25 = vadd.f32 %v42_v17, %v41_v16  ;;  %v54_v34 = vmul.f32 %v271_v29, %v271_v29  ;;  %v67_v35 = vadd.f32 %v48_v27, %v47_v26  ;;  %v52_v37 = vmul.f32 %v275_v31, %v275_v31 }
  0x1a   :  { %v70_v32 = vadd.f32 %v50_v24, %v49_v23  ;;  %p186_p12 = pnand %p185_p11, %p179_p8 }
  0x1b   :  { %v76_v38 = vadd.f32 %v54_v34, %v53_v33  ;;  %v73_v39 = vadd.f32 %v52_v37, %v51_v36 }
  0x1c   :  { %65 = vadd.xlane.f32.xlu1 %v64_v22 }
  0x1d   :  { %59 = vadd.xlane.f32.xlu0 %v58_v25 }
  0x20   :  { %71 = vadd.xlane.f32.xlu1 %v70_v32 }
  0x21   :  { %68 = vadd.xlane.f32.xlu0 %v67_v35 }
  0x24   :  { %77 = vadd.xlane.f32.xlu1 %v76_v38 }
  0x25   :  { %74 = vadd.xlane.f32.xlu0 %v73_v39 }
  0xa5   :  { %v63_v40 = vpop.xlane.xlu1 %62 }
  0xa6   :  { %140 = vrsqrt.f32 %v63_v40  ;;  %v57_v41 = vpop.xlane.xlu0 %56 }
  0xa7   :  { %142 = vrsqrt.f32 %v57_v41 }
  0xa9   :  { %v66_v42 = vpop.xlane.xlu1 %65 }
  0xaa   :  { %144 = vrsqrt.f32 %v66_v42  ;;  %v60_v43 = vpop.xlane.xlu0 %59 }
  0xab   :  { %146 = vrsqrt.f32 %v60_v43 }
  0xad   :  { %v72_v44 = vpop.xlane.xlu1 %71 }
  0xae   :  { %148 = vrsqrt.f32 %v72_v44  ;;  %v69_v45 = vpop.xlane.xlu0 %68 }
  0xaf   :  { %150 = vrsqrt.f32 %v69_v45 }
  0xb0   :  { %v141_v46 = vpop.eup %140 }
  0xb1   :  { %v143_v47 = vpop.eup %142  ;;  %v91_v48 = vmul.f32 %v141_v46, %v27_v0  ;;  %v92_v49 = vmul.f32 %v141_v46, %v28_v1  ;;  %v78_v50 = vpop.xlane.xlu1 %77 }
  0xb2   :  { %v87_v51 = vmul.f32 %v143_v47, %v233_v2  ;;  %v88_v52 = vmul.f32 %v143_v47, %v24_v5  ;;  %152 = vrsqrt.f32 %v78_v50  ;;  %v75_v53 = vpop.xlane.xlu0 %74 }
  0xb3   :  { %107 = vst [vmem:[#allocation5 + $0x20] sm:$0xff] %v91_v48  ;;  %108 = vst [vmem:[#allocation5 + $0x28] sm:$0xff] %v92_v49  ;;  %154 = vrsqrt.f32 %v75_v53 }
  0xb4   :  { %v145_v54 = vpop.eup %144  ;;  %103 = vst [vmem:[#allocation5] sm:$0xff] %v87_v51  ;;  %104 = vst [vmem:[#allocation5 + $0x8] sm:$0xff] %v88_v52 }
  0xb5   :  { %v147_v55 = vpop.eup %146  ;;  %v93_v56 = vmul.f32 %v145_v54, %v237_v7  ;;  %v94_v57 = vmul.f32 %v145_v54, %v239_v8 }
  0xb6   :  { %v89_v58 = vmul.f32 %v147_v55, %v245_v12  ;;  %v90_v59 = vmul.f32 %v147_v55, %v247_v13 }
  0xb7   :  { %109 = vst [vmem:[#allocation5 + $0x30] sm:$0xff] %v93_v56  ;;  %110 = vst [vmem:[#allocation5 + $0x38] sm:$0xff] %v94_v57 }
  0xb8   :  { %v149_v60 = vpop.eup %148  ;;  %105 = vst [vmem:[#allocation5 + $0x10] sm:$0xff] %v89_v58  ;;  %106 = vst [vmem:[#allocation5 + $0x18] sm:$0xff] %v90_v59 }
  0xb9   :  { %v151_v61 = vpop.eup %150  ;;  %v97_v62 = vmul.f32 %v149_v60, %v249_v14  ;;  %v98_v63 = vmul.f32 %v149_v60, %v255_v18 }
  0xba   :  { %v95_v0 = vmul.f32 %v151_v61, %v257_v19  ;;  %v96_v1 = vmul.f32 %v151_v61, %v259_v20 }
  0xbb   :  { %113 = vst [vmem:[#allocation5 + $0x50] sm:$0xff] %v97_v62  ;;  %114 = vst [vmem:[#allocation5 + $0x58] sm:$0xff] %v98_v63 }
  0xbc   :  { %v153_v2 = vpop.eup %152  ;;  %111 = vst [vmem:[#allocation5 + $0x40] sm:$0xff] %v95_v0  ;;  %112 = vst [vmem:[#allocation5 + $0x48] sm:$0xff] %v96_v1 }
  0xbd   :  { %v155_v3 = vpop.eup %154  ;;  %v101_v4 = vmul.f32 %v153_v2, %v269_v28  ;;  %v102_v5 = vmul.f32 %v153_v2, %v271_v29 }
  0xbe   :  { %v99_v6 = vmul.f32 %v155_v3, %v273_v30  ;;  %v100_v7 = vmul.f32 %v155_v3, %v275_v31 }
  0xbf   :  { %117 = vst [vmem:[#allocation5 + $0x70] sm:$0xff] %v101_v4  ;;  %118 = vst [vmem:[#allocation5 + $0x78] sm:$0xff] %v102_v5 }
  0xc0   :  { %115 = vst [vmem:[#allocation5 + $0x60] sm:$0xff] %v99_v6  ;;  %116 = vst [vmem:[#allocation5 + $0x68] sm:$0xff] %v100_v7 }
  0xc1   :  { %189 = shalt.err (!%p186_p12)
}
  0xc2   :  { %s190_s24 = scalar_lea.hbm %s314_s1, 2048 }
  0xc3   :  { %p191_p13 = scmp.ne.s32.totalorder %s314_s1, %s190_s24  ;;  %p194_p0 = scmp.lt.u32.totalorder %s190_s24, %s314_s1 }
  0xc5   :  { %p196_p1 = pnand %p194_p0, %p191_p13 }
  0xc7   :  { %199 = shalt.err (!%p196_p1)
}
  0xc8   :  { %130 = dma.vmem_to_hbm [thread:$0]  %s125_s20, 2048, %s314_s1, [#allocation4], %s205_s16, %s205_s16, %s206_s17  }
  0xc9   :  { %202 = dma.done.wait [#allocation4], 2048  }
  0xca   :  { %203 = vsyncadd [#allocation4], 4294965248 }
  0xcb   :  { %134 = vsyncpa [#allocation3], 1 }
  0xcc   :  { %135 = vsyncpa [#allocation4], 1 }

</bundles_post_ra>
